<compile_context>
chip_gen: v7x
topology: tpu7x:2x2x1
jax: 0.10.0
libtpu: 0.0.40
codegen_flags: <defaults>
</compile_context>

<pallas_src>
import functools

import jax
import jax.numpy as jnp
from jax.experimental import pallas as pl
from jax.experimental.pallas import tpu as pltpu

# ---- sizes (small, lane-dim friendly) ----
B = 2          # batch
N_CROPS = 4    # Siamese concatenates 4 heads -> ConvBnRelu1d(n_feats * 4, n_feats)
C, H_IMG, W_IMG = 4, 16, 16
D_IN = C * H_IMG * W_IMG          # 1024
HIDDEN = 128
N_FEATS = 128                     # one_head.last_linear.layer.in_features
N_CLASSES = 8
BN_EPS = 1e-5


# ------------------------------------------------------------------
# Single fused kernel: heads (features -> logits) for all crops as one
# M = B*N_CROPS matmul, concat held in a VMEM scratch, then
# ConvBnRelu1d (Linear + BatchNorm1d train-mode + ReLU) and last_linear.
# ------------------------------------------------------------------
def fused_kernel(x_ref, w1_ref, b1_ref, w2_ref, b2_ref, wc_ref, bc_ref,
                 g_ref, beta_ref, wl_ref, bl_ref, o_ref, cat_ref):
    # x_ref: (B*N_CROPS, D_IN) f32, row r = (b, crop) with r = b*N_CROPS + crop.
    xs = x_ref[...].astype(jnp.bfloat16)                             # (8, 1024)

    # one_head.features: relu(x @ W1 + b1)  -- one M=8 MXU matmul for all crops.
    h = jnp.dot(xs, w1_ref[...], preferred_element_type=jnp.float32) + b1_ref[...]
    h = jnp.maximum(h, 0.0)                                          # (8, HIDDEN) f32

    # one_head.logits: h @ W2 + b2
    logits = jnp.dot(h.astype(jnp.bfloat16), w2_ref[...],
                     preferred_element_type=jnp.float32) + b2_ref[...]  # (8, N_FEATS)

    # torch.cat(heads, dim=-1): materialized only in VMEM scratch (bf16, feeds MXU).
    # cat[b, i*N_FEATS:(i+1)*N_FEATS] = logits[b*N_CROPS + i, :]
    for b in range(B):                       # unrolled at trace time (8 tiny copies)
        for i in range(N_CROPS):
            r = b * N_CROPS + i
            cat_ref[b:b + 1, i * N_FEATS:(i + 1) * N_FEATS] = (
                logits[r:r + 1, :].astype(jnp.bfloat16))

    # ConvBnRelu1d.conv (Linear): one (B, 4*N_FEATS) @ (4*N_FEATS, N_FEATS) matmul.
    y = jnp.dot(cat_ref[...], wc_ref[...],
                preferred_element_type=jnp.float32) + bc_ref[...]    # (B, N_FEATS) f32

    # ConvBnRelu1d.bn: BatchNorm1d train-mode batch statistics (biased variance).
    # TODO(synk): running_mean/running_var buffer updates (training side effect) are
    #             not modeled; they do not affect the forward output.
    mean = jnp.mean(y, axis=0, keepdims=True)
    var = jnp.mean((y - mean) * (y - mean), axis=0, keepdims=True)
    y = g_ref[...] * ((y - mean) * jax.lax.rsqrt(var + BN_EPS)) + beta_ref[...]

    # ConvBnRelu1d.relu
    y = jnp.maximum(y, 0.0)

    # one_head.last_linear
    o_ref[...] = jnp.dot(y.astype(jnp.bfloat16), wl_ref[...],
                         preferred_element_type=jnp.float32) + bl_ref[...]


def fused_siamese(x2d, p):
    vmem = functools.partial(pl.BlockSpec, memory_space=pltpu.MemorySpace.VMEM)
    return pl.pallas_call(
        fused_kernel,
        out_shape=jax.ShapeDtypeStruct((B, N_CLASSES), jnp.float32),
        in_specs=[vmem()] * 11,
        out_specs=vmem(),
        scratch_shapes=[pltpu.VMEM((B, N_CROPS * N_FEATS), jnp.bfloat16)],
    )(x2d, p["w1"], p["b1"], p["w2"], p["b2"], p["wc"], p["bc"],
      p["gamma"], p["beta"], p["wl"], p["bl"])


# ------------------------------------------------------------------
# Full Siamese forward: only a free contiguous reshape outside the kernel.
# ------------------------------------------------------------------
@jax.jit
def siamese_forward(x, params):
    # x: [B, N_CROPS, C, H, W] (NCHW per crop) -> [B*N_CROPS, D_IN] (free reshape,
    # no transpose / HBM relayout).
    x2d = x.reshape(B * N_CROPS, D_IN)
    return fused_siamese(x2d, params)            # [B, N_CLASSES]


# Pure-JAX reference. It mirrors the kernel's mixed-precision policy (bf16 MXU
# operands, f32 accumulation, f32 bias/BN/ReLU), so the comparison is tight.
def siamese_reference(x, p):
    bf16 = jnp.bfloat16
    f32 = jnp.float32
    x_flat = x.reshape(B, N_CROPS, D_IN)
    heads = []
    for i in range(N_CROPS):
        h = jnp.dot(x_flat[:, i].astype(bf16), p["w1"],
                    preferred_element_type=f32) + p["b1"]
        h = jnp.maximum(h, 0.0)
        heads.append(jnp.dot(h.astype(bf16), p["w2"],
                             preferred_element_type=f32) + p["b2"])
    cat = jnp.concatenate(heads, axis=-1)
    y = jnp.dot(cat.astype(bf16), p["wc"], preferred_element_type=f32) + p["bc"]
    mean = jnp.mean(y, axis=0, keepdims=True)
    var = jnp.mean((y - mean) ** 2, axis=0, keepdims=True)
    y = p["gamma"] * (y - mean) * jax.lax.rsqrt(var + BN_EPS) + p["beta"]
    y = jnp.maximum(y, 0.0)
    return jnp.dot(y.astype(bf16), p["wl"], preferred_element_type=f32) + p["bl"]


def init_params(key):
    ks = jax.random.split(key, 8)
    s = lambda fan_in: 1.0 / jnp.sqrt(fan_in)
    u = lambda k, shape, b: jax.random.uniform(k, shape, jnp.float32, -b, b)
    return {
        # one_head.features: D_IN -> HIDDEN   (large weights stored bf16 for the MXU)
        "w1": u(ks[0], (D_IN, HIDDEN), s(D_IN)).astype(jnp.bfloat16),
        "b1": u(ks[1], (1, HIDDEN), s(D_IN)),
        # one_head.logits: HIDDEN -> N_FEATS
        "w2": u(ks[2], (HIDDEN, N_FEATS), s(HIDDEN)).astype(jnp.bfloat16),
        "b2": u(ks[3], (1, N_FEATS), s(HIDDEN)),
        # conv_1d_last.conv: 4*N_FEATS -> N_FEATS
        "wc": u(ks[4], (N_CROPS * N_FEATS, N_FEATS),
                s(N_CROPS * N_FEATS)).astype(jnp.bfloat16),
        "bc": u(ks[5], (1, N_FEATS), s(N_CROPS * N_FEATS)),
        # conv_1d_last.bn (fresh init: gamma=1, beta=0)
        "gamma": jnp.ones((1, N_FEATS), jnp.float32),
        "beta": jnp.zeros((1, N_FEATS), jnp.float32),
        # one_head.last_linear: N_FEATS -> N_CLASSES
        "wl": u(ks[6], (N_FEATS, N_CLASSES), s(N_FEATS)).astype(jnp.bfloat16),
        "bl": u(ks[7], (1, N_CLASSES), s(N_FEATS)),
    }


if __name__ == "__main__":
    key = jax.random.PRNGKey(0)
    k_x, k_p = jax.random.split(key)
    x = jax.random.normal(k_x, (B, N_CROPS, C, H_IMG, W_IMG), jnp.float32)
    params = init_params(k_p)

    out = jax.block_until_ready(siamese_forward(x, params))
    ref = siamese_reference(x, params)

    assert out.shape == (B, N_CLASSES)
    assert jnp.allclose(out, ref, atol=1e-2, rtol=1e-2), "Pallas output mismatch vs reference"
    print("KERNEL_OK")
</pallas_src>

<mosaic_0001>
module attributes {stable_mosaic.version = 11 : i64} {
  func.func @fused_kernel(%arg0: memref<8x1024xf32, #tpu.memory_space<vmem>>, %arg1: memref<1024x128xbf16, #tpu.memory_space<vmem>>, %arg2: memref<1x128xf32, #tpu.memory_space<vmem>>, %arg3: memref<128x128xbf16, #tpu.memory_space<vmem>>, %arg4: memref<1x128xf32, #tpu.memory_space<vmem>>, %arg5: memref<512x128xbf16, #tpu.memory_space<vmem>>, %arg6: memref<1x128xf32, #tpu.memory_space<vmem>>, %arg7: memref<1x128xf32, #tpu.memory_space<vmem>>, %arg8: memref<1x128xf32, #tpu.memory_space<vmem>>, %arg9: memref<128x8xbf16, #tpu.memory_space<vmem>>, %arg10: memref<1x8xf32, #tpu.memory_space<vmem>>, %arg11: memref<2x8xf32, #tpu.memory_space<vmem>>, %arg12: memref<2x512xbf16, #tpu.memory_space<vmem>>) attributes {dimension_semantics = [], scalar_prefetch = 0 : i64, scratch_operands = 1 : i64, tpu.core_type = #tpu.core_type<tc>} {
    %c0 = arith.constant 0 : index
    %c0_0 = arith.constant 0 : index
    %0 = vector.load %arg0[%c0, %c0_0] : memref<8x1024xf32, #tpu.memory_space<vmem>>, vector<8x1024xf32>
    %1 = arith.truncf %0 : vector<8x1024xf32> to vector<8x1024xbf16>
    %c0_1 = arith.constant 0 : index
    %c0_2 = arith.constant 0 : index
    %2 = vector.load %arg1[%c0_1, %c0_2] : memref<1024x128xbf16, #tpu.memory_space<vmem>>, vector<1024x128xbf16>
    %cst = arith.constant dense<0.000000e+00> : vector<8x128xf32>
    %3 = tpu.matmul %1, %2, %cst {dimension_numbers = #tpu.dot_dimension_numbers<[1], [0], [0], [1], [0, 0, 1, 1], [], []>} : vector<8x1024xbf16>, vector<1024x128xbf16>, vector<8x128xf32> -> vector<8x128xf32>
    %c0_3 = arith.constant 0 : index
    %c0_4 = arith.constant 0 : index
    %4 = vector.load %arg2[%c0_3, %c0_4] : memref<1x128xf32, #tpu.memory_space<vmem>>, vector<1x128xf32>
    %5 = vector.broadcast %4 : vector<1x128xf32> to vector<8x128xf32>
    %6 = arith.addf %3, %5 : vector<8x128xf32>
    %cst_5 = arith.constant 0.000000e+00 : f32
    %7 = vector.broadcast %cst_5 : f32 to vector<8x128xf32>
    %8 = arith.maximumf %6, %7 : vector<8x128xf32>
    %9 = arith.truncf %8 : vector<8x128xf32> to vector<8x128xbf16>
    %c0_6 = arith.constant 0 : index
    %c0_7 = arith.constant 0 : index
    %10 = vector.load %arg3[%c0_6, %c0_7] : memref<128x128xbf16, #tpu.memory_space<vmem>>, vector<128x128xbf16>
    %cst_8 = arith.constant dense<0.000000e+00> : vector<8x128xf32>
    %11 = tpu.matmul %9, %10, %cst_8 {dimension_numbers = #tpu.dot_dimension_numbers<[1], [0], [0], [1], [0, 0, 1, 1], [], []>} : vector<8x128xbf16>, vector<128x128xbf16>, vector<8x128xf32> -> vector<8x128xf32>
    %c0_9 = arith.constant 0 : index
    %c0_10 = arith.constant 0 : index
    %12 = vector.load %arg4[%c0_9, %c0_10] : memref<1x128xf32, #tpu.memory_space<vmem>>, vector<1x128xf32>
    %13 = vector.broadcast %12 : vector<1x128xf32> to vector<8x128xf32>
    %14 = arith.addf %11, %13 : vector<8x128xf32>
    %15 = vector.extract_strided_slice %14 {offsets = [0, 0], sizes = [1, 128], strides = [1, 1]} : vector<8x128xf32> to vector<1x128xf32>
    %16 = arith.truncf %15 : vector<1x128xf32> to vector<1x128xbf16>
    %c0_11 = arith.constant 0 : index
    %c0_12 = arith.constant 0 : index
    %17 = vector.load %arg12[%c0_11, %c0_12] : memref<2x512xbf16, #tpu.memory_space<vmem>>, vector<1x128xbf16>
    tpu.vector_store %arg12[%c0_11, %c0_12], %16 {strides = array<i32>} : memref<2x512xbf16, #tpu.memory_space<vmem>>, vector<1x128xbf16>,
    %18 = vector.extract_strided_slice %14 {offsets = [1, 0], sizes = [1, 128], strides = [1, 1]} : vector<8x128xf32> to vector<1x128xf32>
    %19 = arith.truncf %18 : vector<1x128xf32> to vector<1x128xbf16>
    %c0_13 = arith.constant 0 : index
    %c128 = arith.constant 128 : index
    %20 = vector.load %arg12[%c0_13, %c128] : memref<2x512xbf16, #tpu.memory_space<vmem>>, vector<1x128xbf16>
    tpu.vector_store %arg12[%c0_13, %c128], %19 {strides = array<i32>} : memref<2x512xbf16, #tpu.memory_space<vmem>>, vector<1x128xbf16>,
    %21 = vector.extract_strided_slice %14 {offsets = [2, 0], sizes = [1, 128], strides = [1, 1]} : vector<8x128xf32> to vector<1x128xf32>
    %22 = arith.truncf %21 : vector<1x128xf32> to vector<1x128xbf16>
    %c0_14 = arith.constant 0 : index
    %c256 = arith.constant 256 : index
    %23 = vector.load %arg12[%c0_14, %c256] : memref<2x512xbf16, #tpu.memory_space<vmem>>, vector<1x128xbf16>
    tpu.vector_store %arg12[%c0_14, %c256], %22 {strides = array<i32>} : memref<2x512xbf16, #tpu.memory_space<vmem>>, vector<1x128xbf16>,
    %24 = vector.extract_strided_slice %14 {offsets = [3, 0], sizes = [1, 128], strides = [1, 1]} : vector<8x128xf32> to vector<1x128xf32>
    %25 = arith.truncf %24 : vector<1x128xf32> to vector<1x128xbf16>
    %c0_15 = arith.constant 0 : index
    %c384 = arith.constant 384 : index
    %26 = vector.load %arg12[%c0_15, %c384] : memref<2x512xbf16, #tpu.memory_space<vmem>>, vector<1x128xbf16>
    tpu.vector_store %arg12[%c0_15, %c384], %25 {strides = array<i32>} : memref<2x512xbf16, #tpu.memory_space<vmem>>, vector<1x128xbf16>,
    %27 = vector.extract_strided_slice %14 {offsets = [4, 0], sizes = [1, 128], strides = [1, 1]} : vector<8x128xf32> to vector<1x128xf32>
    %28 = arith.truncf %27 : vector<1x128xf32> to vector<1x128xbf16>
    %c1 = arith.constant 1 : index
    %c0_16 = arith.constant 0 : index
    %29 = vector.load %arg12[%c1, %c0_16] : memref<2x512xbf16, #tpu.memory_space<vmem>>, vector<1x128xbf16>
    tpu.vector_store %arg12[%c1, %c0_16], %28 {strides = array<i32>} : memref<2x512xbf16, #tpu.memory_space<vmem>>, vector<1x128xbf16>,
    %30 = vector.extract_strided_slice %14 {offsets = [5, 0], sizes = [1, 128], strides = [1, 1]} : vector<8x128xf32> to vector<1x128xf32>
    %31 = arith.truncf %30 : vector<1x128xf32> to vector<1x128xbf16>
    %c1_17 = arith.constant 1 : index
    %c128_18 = arith.constant 128 : index
    %32 = vector.load %arg12[%c1_17, %c128_18] : memref<2x512xbf16, #tpu.memory_space<vmem>>, vector<1x128xbf16>
    tpu.vector_store %arg12[%c1_17, %c128_18], %31 {strides = array<i32>} : memref<2x512xbf16, #tpu.memory_space<vmem>>, vector<1x128xbf16>,
    %33 = vector.extract_strided_slice %14 {offsets = [6, 0], sizes = [1, 128], strides = [1, 1]} : vector<8x128xf32> to vector<1x128xf32>
    %34 = arith.truncf %33 : vector<1x128xf32> to vector<1x128xbf16>
    %c1_19 = arith.constant 1 : index
    %c256_20 = arith.constant 256 : index
    %35 = vector.load %arg12[%c1_19, %c256_20] : memref<2x512xbf16, #tpu.memory_space<vmem>>, vector<1x128xbf16>
    tpu.vector_store %arg12[%c1_19, %c256_20], %34 {strides = array<i32>} : memref<2x512xbf16, #tpu.memory_space<vmem>>, vector<1x128xbf16>,
    %36 = vector.extract_strided_slice %14 {offsets = [7, 0], sizes = [1, 128], strides = [1, 1]} : vector<8x128xf32> to vector<1x128xf32>
    %37 = arith.truncf %36 : vector<1x128xf32> to vector<1x128xbf16>
    %c1_21 = arith.constant 1 : index
    %c384_22 = arith.constant 384 : index
    %38 = vector.load %arg12[%c1_21, %c384_22] : memref<2x512xbf16, #tpu.memory_space<vmem>>, vector<1x128xbf16>
    tpu.vector_store %arg12[%c1_21, %c384_22], %37 {strides = array<i32>} : memref<2x512xbf16, #tpu.memory_space<vmem>>, vector<1x128xbf16>,
    %c0_23 = arith.constant 0 : index
    %c0_24 = arith.constant 0 : index
    %39 = vector.load %arg12[%c0_23, %c0_24] : memref<2x512xbf16, #tpu.memory_space<vmem>>, vector<2x512xbf16>
    %c0_25 = arith.constant 0 : index
    %c0_26 = arith.constant 0 : index
    %40 = vector.load %arg5[%c0_25, %c0_26] : memref<512x128xbf16, #tpu.memory_space<vmem>>, vector<512x128xbf16>
    %cst_27 = arith.constant dense<0.000000e+00> : vector<2x128xf32>
    %41 = tpu.matmul %39, %40, %cst_27 {dimension_numbers = #tpu.dot_dimension_numbers<[1], [0], [0], [1], [0, 0, 1, 1], [], []>} : vector<2x512xbf16>, vector<512x128xbf16>, vector<2x128xf32> -> vector<2x128xf32>
    %c0_28 = arith.constant 0 : index
    %c0_29 = arith.constant 0 : index
    %42 = vector.load %arg6[%c0_28, %c0_29] : memref<1x128xf32, #tpu.memory_space<vmem>>, vector<1x128xf32>
    %43 = vector.broadcast %42 : vector<1x128xf32> to vector<2x128xf32>
    %44 = arith.addf %41, %43 : vector<2x128xf32>
    %cst_30 = arith.constant dense<0.000000e+00> : vector<128xf32>
    %45 = vector.multi_reduction <add>, %44, %cst_30 [0] : vector<2x128xf32> to vector<128xf32>
    %46 = vector.shape_cast %45 : vector<128xf32> to vector<1x128xf32>
    %cst_31 = arith.constant 2.000000e+00 : f32
    %47 = vector.broadcast %cst_31 : f32 to vector<1x128xf32>
    %48 = arith.divf %46, %47 : vector<1x128xf32>
    %49 = vector.broadcast %48 : vector<1x128xf32> to vector<2x128xf32>
    %50 = arith.subf %44, %49 : vector<2x128xf32>
    %51 = vector.broadcast %48 : vector<1x128xf32> to vector<2x128xf32>
    %52 = arith.subf %44, %51 : vector<2x128xf32>
    %53 = arith.mulf %50, %52 : vector<2x128xf32>
    %cst_32 = arith.constant dense<0.000000e+00> : vector<128xf32>
    %54 = vector.multi_reduction <add>, %53, %cst_32 [0] : vector<2x128xf32> to vector<128xf32>
    %55 = vector.shape_cast %54 : vector<128xf32> to vector<1x128xf32>
    %cst_33 = arith.constant 2.000000e+00 : f32
    %56 = vector.broadcast %cst_33 : f32 to vector<1x128xf32>
    %57 = arith.divf %55, %56 : vector<1x128xf32>
    %c0_34 = arith.constant 0 : index
    %c0_35 = arith.constant 0 : index
    %58 = vector.load %arg7[%c0_34, %c0_35] : memref<1x128xf32, #tpu.memory_space<vmem>>, vector<1x128xf32>
    %59 = vector.broadcast %48 : vector<1x128xf32> to vector<2x128xf32>
    %60 = arith.subf %44, %59 : vector<2x128xf32>
    %cst_36 = arith.constant 9.99999974E-6 : f32
    %61 = vector.broadcast %cst_36 : f32 to vector<1x128xf32>
    %62 = arith.addf %57, %61 : vector<1x128xf32>
    %63 = math.rsqrt %62 : vector<1x128xf32>
    %64 = vector.broadcast %63 : vector<1x128xf32> to vector<2x128xf32>
    %65 = arith.mulf %60, %64 : vector<2x128xf32>
    %66 = vector.broadcast %58 : vector<1x128xf32> to vector<2x128xf32>
    %67 = arith.mulf %66, %65 : vector<2x128xf32>
    %c0_37 = arith.constant 0 : index
    %c0_38 = arith.constant 0 : index
    %68 = vector.load %arg8[%c0_37, %c0_38] : memref<1x128xf32, #tpu.memory_space<vmem>>, vector<1x128xf32>
    %69 = vector.broadcast %68 : vector<1x128xf32> to vector<2x128xf32>
    %70 = arith.addf %67, %69 : vector<2x128xf32>
    %cst_39 = arith.constant 0.000000e+00 : f32
    %71 = vector.broadcast %cst_39 : f32 to vector<2x128xf32>
    %72 = arith.maximumf %70, %71 : vector<2x128xf32>
    %73 = arith.truncf %72 : vector<2x128xf32> to vector<2x128xbf16>
    %c0_40 = arith.constant 0 : index
    %c0_41 = arith.constant 0 : index
    %74 = vector.load %arg9[%c0_40, %c0_41] : memref<128x8xbf16, #tpu.memory_space<vmem>>, vector<128x8xbf16>
    %cst_42 = arith.constant dense<0.000000e+00> : vector<2x8xf32>
    %75 = tpu.matmul %73, %74, %cst_42 {dimension_numbers = #tpu.dot_dimension_numbers<[1], [0], [0], [1], [0, 0, 1, 1], [], []>} : vector<2x128xbf16>, vector<128x8xbf16>, vector<2x8xf32> -> vector<2x8xf32>
    %c0_43 = arith.constant 0 : index
    %c0_44 = arith.constant 0 : index
    %76 = vector.load %arg10[%c0_43, %c0_44] : memref<1x8xf32, #tpu.memory_space<vmem>>, vector<1x8xf32>
    %77 = vector.broadcast %76 : vector<1x8xf32> to vector<2x8xf32>
    %78 = arith.addf %75, %77 : vector<2x8xf32>
    %c0_45 = arith.constant 0 : index
    %c0_46 = arith.constant 0 : index
    %79 = vector.load %arg11[%c0_45, %c0_46] : memref<2x8xf32, #tpu.memory_space<vmem>>, vector<2x8xf32>
    tpu.vector_store %arg11[%c0_45, %c0_46], %78 {strides = array<i32>} : memref<2x8xf32, #tpu.memory_space<vmem>>, vector<2x8xf32>,
    return
  }
}

</mosaic_0001>

<bundles_post_ra>
// kernel: siamese_forward.1
= control target key start
LH: loop header
LB: loop body
LE: loop exit
PB: predicated region body
PF: predicated region fallthrough
CT: control target
= control target key end

     0   :  { %16 = vsyncpa [#allocation4], 0  ;;  %s2381_s0 = inlined_call_operand.vmem [shape: f32[8,1024], index: 0, kind: input, shape index: {}]   ;;  %s2382_s1 = inlined_call_operand.vmem [shape: bf16[1024,128], index: 1, kind: input, shape index: {}]   ;;  %s2383_s2 = inlined_call_operand.vmem [shape: f32[1,128], index: 2, kind: input, shape index: {}]   ;;  %s2384_s3 = inlined_call_operand.vmem [shape: bf16[128,128], index: 3, kind: input, shape index: {}]   ;;  %s2385_s4 = inlined_call_operand.vmem [shape: f32[1,128], index: 4, kind: input, shape index: {}]   ;;  %s2386_s5 = inlined_call_operand.hbm [shape: bf16[512,128], index: 5, kind: input, shape index: {}]   ;;  %s2387_s6 = inlined_call_operand.vmem [shape: f32[1,128], index: 6, kind: input, shape index: {}]   ;;  %s2388_s7 = inlined_call_operand.vmem [shape: f32[1,128], index: 7, kind: input, shape index: {}]   ;;  %s2389_s8 = inlined_call_operand.vmem [shape: f32[1,128], index: 8, kind: input, shape index: {}]   ;;  %s2390_s9 = inlined_call_operand.vmem [shape: bf16[128,8], index: 9, kind: input, shape index: {}]   ;;  %s2391_s10 = inlined_call_operand.vmem [shape: f32[1,8], index: 10, kind: input, shape index: {}]   ;;  %s2392_s11 = inlined_call_operand.hbm [shape: f32[2,8], index: 11, kind: output, shape index: {}]  }
   0x1   :  { %17 = vsyncpa [#allocation5], 0  ;;  %s1962_s17 = smov [#allocation3]   ;;  %s1914_s21 = scalar_lea.hbm %s2386_s5, 4096 }
   0x2   :  { %s33_s18 = sshll.u32 %s1962_s17, 4  ;;  %p1915_p0 = scmp.ne.s32.totalorder %s2386_s5, %s1914_s21  ;;  %s34_s18 = int_to_ptr.vmem [resolvable:$true] %s33_s18 }
   0x3   :  { %p1918_p1 = scmp.lt.u32.totalorder %s1914_s21, %s2386_s5 }
   0x5   :  { %p1920_p2 = pnand %p1918_p1, %p1915_p0 }
   0x7   :  { %1923 = shalt.err (!%p1920_p2)
}
   0x8   :  { %s1924_s26 = scalar_lea.vmem %s34_s18, 4096  ;;  %p1929_p4 = scmp.lt.s32.totalorder %s34_s18, %s34_s18 }
   0x9   :  { %p1925_p3 = scmp.ne.s32.totalorder %s34_s18, %s1924_s26  ;;  %p1930_p5 = scmp.lt.s32.totalorder %s1924_s26, %s1924_s26 }
   0xb   :  { %p1931_p6 = por %p1930_p5, %p1929_p4 }
   0xd   :  { %p1932_p7 = pnand %p1931_p6, %p1925_p3 }
   0xf   :  { %1935 = shalt.err (!%p1932_p7)
}
  0x10   :  { %s1963_s27 = smov 64   ;;  %s1964_s28 = smov 4  }
  0x11   :  { %39 = dma.hbm_to_vmem [thread:$0]  %s2386_s5, 4096, %s34_s18, [#allocation4], %s1963_s27, %s1963_s27, %s1964_s28  }
  0x12   :  { %1958 = dma.done.wait [#allocation4], 4096  }
  0x13   :  { %1959 = vsyncadd [#allocation4], 4294963200  ;;  %v1800_v0 = vld [vmem:[%s2382_s1 + $0x40] sm:$0xff]   ;;  %v1804_v4 = vld [vmem:[%s2382_s1 + $0x48] sm:$0xff]   ;;  %vm1966_vm0 = vmmov 0   ;;  %vm863_vm1 = vcmask 1040384  }
  0x14   :  { %v1801_v1 = vld [vmem:[%s2382_s1 + $0xc0] sm:$0xff]   ;;  %1603 = vmatprep.subr.bf16.mxu0 %v1800_v0  ;;  %v1805_v5 = vld [vmem:[%s2382_s1 + $0xc8] sm:$0xff]   ;;  %v1808_v8 = vld [vmem:[%s2382_s1 + $0x50] sm:$0xff]   ;;  %vm864_vm2 = vsmask.f32 256  ;;  %vm1313_vm6 = vcmask 1041408  }
  0x15   :  { %v1802_v2 = vld [vmem:[%s2382_s1] sm:$0xff]   ;;  %1625 = vmatprep.subr.bf16.mxu1 %v1801_v1  ;;  %v1806_v6 = vld [vmem:[%s2382_s1 + $0x8] sm:$0xff]   ;;  %v1809_v9 = vld [vmem:[%s2382_s1 + $0xd0] sm:$0xff]   ;;  %vm919_vm4 = vsmask.f32 7938  ;;  %s1968_s30 = smov [#allocation6]  }
  0x16   :  { %v1803_v3 = vld [vmem:[%s2382_s1 + $0x80] sm:$0xff]   ;;  %1604 = vmatpush3.bf16.msra.mxu0 %v1802_v2  ;;  %v1807_v7 = vld [vmem:[%s2382_s1 + $0x88] sm:$0xff]   ;;  %v1810_v10 = vld [vmem:[%s2382_s1 + $0x10] sm:$0xff]   ;;  %vm1465_vm7 = vcmask 58368  }
  0x17   :  { %1626 = vmatpush3.bf16.msra.mxu1 %v1803_v3  ;;  %1605 = vmatprep.subr.bf16.mxu0 %v1804_v4  ;;  %v1811_v11 = vld [vmem:[%s2382_s1 + $0x90] sm:$0xff]   ;;  %v1812_v12 = vld [vmem:[%s2382_s1 + $0x58] sm:$0xff]   ;;  %v1816_v16 = vld [vmem:[%s2382_s1 + $0x60] sm:$0xff]  }
  0x18   :  { %1627 = vmatprep.subr.bf16.mxu1 %v1805_v5  ;;  %v1813_v13 = vld [vmem:[%s2382_s1 + $0xd8] sm:$0xff]   ;;  %v1817_v17 = vld [vmem:[%s2382_s1 + $0xe0] sm:$0xff]   ;;  %v1820_v20 = vld [vmem:[%s2382_s1 + $0x68] sm:$0xff]  }
  0x19   :  { %v1814_v14 = vld [vmem:[%s2382_s1 + $0x18] sm:$0xff]   ;;  %v1818_v18 = vld [vmem:[%s2382_s1 + $0x20] sm:$0xff]   ;;  %v1821_v21 = vld [vmem:[%s2382_s1 + $0xe8] sm:$0xff]  }
  0x1a   :  { %1606 = vmatpush3.bf16.msra.mxu0 %v1806_v6  ;;  %v1815_v15 = vld [vmem:[%s2382_s1 + $0x98] sm:$0xff]   ;;  %v1819_v19 = vld [vmem:[%s2382_s1 + $0xa0] sm:$0xff]   ;;  %v1822_v22 = vld [vmem:[%s2382_s1 + $0x28] sm:$0xff]  }
  0x1b   :  { %1628 = vmatpush3.bf16.msra.mxu1 %v1807_v7  ;;  %1607 = vmatprep.subr.bf16.mxu0 %v1808_v8  ;;  %v1823_v23 = vld [vmem:[%s2382_s1 + $0xa8] sm:$0xff]   ;;  %v1824_v24 = vld [vmem:[%s2382_s1 + $0x70] sm:$0xff]   ;;  %v1828_v28 = vld [vmem:[%s2382_s1 + $0x78] sm:$0xff]  }
  0x1c   :  { %1629 = vmatprep.subr.bf16.mxu1 %v1809_v9  ;;  %v1825_v25 = vld [vmem:[%s2382_s1 + $0xf0] sm:$0xff]   ;;  %v1829_v29 = vld [vmem:[%s2382_s1 + $0xf8] sm:$0xff]   ;;  %v55_v32 = vld [vmem:[%s2381_s0 + $0x8] sm:$0xff] }
  0x1d   :  { %v1826_v26 = vld [vmem:[%s2382_s1 + $0x30] sm:$0xff]   ;;  %v1830_v30 = vld [vmem:[%s2382_s1 + $0x38] sm:$0xff]   ;;  %v54_v34 = vld [vmem:[%s2381_s0] sm:$0xff]  ;;  %v63_v35 = vpack.c.bf16 %v55_v32, %v55_v32 }
  0x1e   :  { %1608 = vmatpush3.bf16.msra.mxu0 %v1810_v10  ;;  %v1827_v27 = vld [vmem:[%s2382_s1 + $0xb0] sm:$0xff]   ;;  %v1831_v31 = vld [vmem:[%s2382_s1 + $0xb8] sm:$0xff]   ;;  %v62_v37 = vpack.c.bf16 %v54_v34, %v54_v34  ;;  %v1832_v40 = vld [vmem:[%s2382_s1 + $0x140] sm:$0xff]  }
  0x1f   :  { %1630 = vmatpush3.bf16.msra.mxu1 %v1811_v11  ;;  %1609 = vmatprep.subr.bf16.mxu0 %v1812_v12  ;;  %v57_v33 = vld [vmem:[%s2381_s0 + $0x18] sm:$0xff]  ;;  %v56_v38 = vld [vmem:[%s2381_s0 + $0x10] sm:$0xff]  ;;  %v1833_v41 = vld [vmem:[%s2382_s1 + $0x1c0] sm:$0xff]  }
  0x20   :  { %1631 = vmatprep.subr.bf16.mxu1 %v1813_v13  ;;  %v65_v36 = vpack.c.bf16 %v57_v33, %v57_v33  ;;  %v64_v39 = vpack.c.bf16 %v56_v38, %v56_v38  ;;  %621 = vmatprep.mubr.bf16.mxu0 %v63_v35  ;;  %v1834_v42 = vld [vmem:[%s2382_s1 + $0x100] sm:$0xff]   ;;  %v1836_v44 = vld [vmem:[%s2382_s1 + $0x148] sm:$0xff]   ;;  %v1840_v48 = vld [vmem:[%s2382_s1 + $0x150] sm:$0xff]  }
  0x21   :  { %v1835_v43 = vld [vmem:[%s2382_s1 + $0x180] sm:$0xff]   ;;  %v1837_v45 = vld [vmem:[%s2382_s1 + $0x1c8] sm:$0xff]   ;;  %v1841_v49 = vld [vmem:[%s2382_s1 + $0x1d0] sm:$0xff]  }
  0x22   :  { %1610 = vmatpush3.bf16.msra.mxu0 %v1814_v14  ;;  %661 = vmatprep.mubr.bf16.mxu1 %v65_v36  ;;  %v1838_v46 = vld [vmem:[%s2382_s1 + $0x108] sm:$0xff]   ;;  %v1842_v50 = vld [vmem:[%s2382_s1 + $0x110] sm:$0xff]   ;;  %v1844_v52 = vld [vmem:[%s2382_s1 + $0x158] sm:$0xff]  }
  0x23   :  { %1632 = vmatpush3.bf16.msra.mxu1 %v1815_v15  ;;  %1611 = vmatprep.subr.bf16.mxu0 %v1816_v16  ;;  %v1839_v47 = vld [vmem:[%s2382_s1 + $0x188] sm:$0xff]   ;;  %v1843_v51 = vld [vmem:[%s2382_s1 + $0x190] sm:$0xff]   ;;  %v1845_v53 = vld [vmem:[%s2382_s1 + $0x1d8] sm:$0xff]  }
  0x24   :  { %1633 = vmatprep.subr.bf16.mxu1 %v1817_v17  ;;  %v1846_v54 = vld [vmem:[%s2382_s1 + $0x118] sm:$0xff]   ;;  %v1848_v56 = vld [vmem:[%s2382_s1 + $0x160] sm:$0xff]   ;;  %v1852_v60 = vld [vmem:[%s2382_s1 + $0x168] sm:$0xff]   ;;  %v1965_v17 = vmov 0.0  }
  0x25   :  { %v1847_v55 = vld [vmem:[%s2382_s1 + $0x198] sm:$0xff]   ;;  %v1849_v57 = vld [vmem:[%s2382_s1 + $0x1e0] sm:$0xff]   ;;  %v1853_v61 = vld [vmem:[%s2382_s1 + $0x1e8] sm:$0xff]  }
  0x26   :  { %1612 = vmatpush3.bf16.msra.mxu0 %v1818_v18  ;;  %v1850_v58 = vld [vmem:[%s2382_s1 + $0x120] sm:$0xff]   ;;  %v1854_v62 = vld [vmem:[%s2382_s1 + $0x128] sm:$0xff]   ;;  %v1856_v0 = vld [vmem:[%s2382_s1 + $0x170] sm:$0xff]  }
  0x27   :  { %1634 = vmatpush3.bf16.msra.mxu1 %v1819_v19  ;;  %1613 = vmatprep.subr.bf16.mxu0 %v1820_v20  ;;  %v1851_v59 = vld [vmem:[%s2382_s1 + $0x1a0] sm:$0xff]   ;;  %v1855_v63 = vld [vmem:[%s2382_s1 + $0x1a8] sm:$0xff]   ;;  %v1857_v1 = vld [vmem:[%s2382_s1 + $0x1f0] sm:$0xff]  }
  0x28   :  { %1635 = vmatprep.subr.bf16.mxu1 %v1821_v21  ;;  %v1858_v2 = vld [vmem:[%s2382_s1 + $0x130] sm:$0xff]   ;;  %v1860_v4 = vld [vmem:[%s2382_s1 + $0x178] sm:$0xff]   ;;  %v59_v8 = vld [vmem:[%s2381_s0 + $0x28] sm:$0xff] }
  0x29   :  { %v1859_v3 = vld [vmem:[%s2382_s1 + $0x1b0] sm:$0xff]   ;;  %v1861_v5 = vld [vmem:[%s2382_s1 + $0x1f8] sm:$0xff]   ;;  %v67_v10 = vpack.c.bf16 %v59_v8, %v59_v8  ;;  %v58_v12 = vld [vmem:[%s2381_s0 + $0x20] sm:$0xff] }
  0x2a   :  { %1614 = vmatpush3.bf16.msra.mxu0 %v1822_v22  ;;  %v1862_v6 = vld [vmem:[%s2382_s1 + $0x138] sm:$0xff]   ;;  %v60_v13 = vld [vmem:[%s2381_s0 + $0x30] sm:$0xff]  ;;  %v66_v14 = vpack.c.bf16 %v58_v12, %v58_v12  ;;  %v1864_v16 = vld [vmem:[%s2384_s3] sm:$0xff]  }
  0x2b   :  { %1636 = vmatpush3.bf16.msra.mxu1 %v1823_v23  ;;  %1615 = vmatprep.subr.bf16.mxu0 %v1824_v24  ;;  %v1863_v7 = vld [vmem:[%s2382_s1 + $0x1b8] sm:$0xff]   ;;  %v68_v15 = vpack.c.bf16 %v60_v13, %v60_v13  ;;  %v1865_v18 = vld [vmem:[%s2384_s3 + $0x8] sm:$0xff]   ;;  %v1866_v19 = vld [vmem:[%s2384_s3 + $0x10] sm:$0xff]  }
  0x2c   :  { %1637 = vmatprep.subr.bf16.mxu1 %v1825_v25  ;;  %v61_v9 = vld [vmem:[%s2381_s0 + $0x38] sm:$0xff]  ;;  %v1868_v21 = vld [vmem:[%s2384_s3 + $0x20] sm:$0xff]   ;;  %v1869_v22 = vld [vmem:[%s2384_s3 + $0x28] sm:$0xff]  }
  0x2d   :  { %v69_v11 = vpack.c.bf16 %v61_v9, %v61_v9  ;;  %v1867_v20 = vld [vmem:[%s2384_s3 + $0x18] sm:$0xff]   ;;  %v1870_v23 = vld [vmem:[%s2384_s3 + $0x30] sm:$0xff]   ;;  %vm2299_vm3 = vmand %vm863_vm1, %vm864_vm2 }
  0x2e   :  { %1616 = vmatpush3.bf16.msra.mxu0 %v1826_v26  ;;  %v1871_v24 = vld [vmem:[%s2384_s3 + $0x38] sm:$0xff]   ;;  %v1892_v8 = vld [vmem:[#allocation3 + $0x68] sm:$0xff]   ;;  %vm2310_vm5 = vmand %vm863_vm1, %vm919_vm4 }
  0x2f   :  { %1638 = vmatpush3.bf16.msra.mxu1 %v1827_v27  ;;  %1617 = vmatprep.subr.bf16.mxu0 %v1828_v28  ;;  %v1482_v27 = vld [vmem:[%s2383_s2] ss:$0 sm:$0xff]  ;;  %v1893_v9 = vld [vmem:[#allocation3 + $0x28] sm:$0xff]   ;;  %v1896_v12 = vld [vmem:[#allocation3 + $0x70] sm:$0xff]   ;;  %s1473_s2 = sshll.u32 %s1968_s30, 4  ;;  %s1474_s2 = int_to_ptr.vmem [resolvable:$true] %s1473_s2 }
  0x30   :  { %1639 = vmatprep.subr.bf16.mxu1 %v1829_v29  ;;  %v1898_v13 = vld [vmem:[#allocation3 + $0xf0] sm:$0xff]   ;;  %p1941_p9 = scmp.lt.s32.totalorder %s1474_s2, %s1474_s2 }
  0x32   :  { %1618 = vmatpush3.bf16.msra.mxu0 %v1830_v30 }
  0x33   :  { %1640 = vmatpush3.bf16.msra.mxu1 %v1831_v31  ;;  %1647 = vmatprep.subr.bf16.mxu0 %v1832_v40 }
  0x34   :  { %1669 = vmatprep.subr.bf16.mxu1 %v1833_v41 }
  0x35   :  { %622 = vmatmul.mubr.bf16.vlgmr.msra.gmra.mrb[0].mxu0 %v62_v37 }
  0x36   :  { %662 = vmatmul.mubr.bf16.vlgmr.msra.gmra.mrb[0].mxu1 %v64_v39  ;;  %1648 = vmatpush3.bf16.msra.mxu0 %v1834_v42 }
  0x37   :  { %1670 = vmatpush3.bf16.msra.mxu1 %v1835_v43  ;;  %1649 = vmatprep.subr.bf16.mxu0 %v1836_v44 }
  0x38   :  { %1671 = vmatprep.subr.bf16.mxu1 %v1837_v45  ;;  %701 = vmatprep.mubr.bf16.mxu0 %v67_v10  ;;  %v1894_v10 = vld [vmem:[#allocation3 + $0xe8] sm:$0xff]  }
  0x39   :  { %741 = vmatprep.mubr.bf16.mxu1 %v69_v11  ;;  %v1895_v11 = vld [vmem:[#allocation3 + $0xa8] sm:$0xff]  }
  0x3a   :  { %1650 = vmatpush3.bf16.msra.mxu0 %v1838_v46 }
  0x3b   :  { %1672 = vmatpush3.bf16.msra.mxu1 %v1839_v47  ;;  %1651 = vmatprep.subr.bf16.mxu0 %v1840_v48 }
  0x3c   :  { %1673 = vmatprep.subr.bf16.mxu1 %v1841_v49 }
  0x3e   :  { %1652 = vmatpush3.bf16.msra.mxu0 %v1842_v50 }
  0x3f   :  { %1674 = vmatpush3.bf16.msra.mxu1 %v1843_v51  ;;  %1653 = vmatprep.subr.bf16.mxu0 %v1844_v52  ;;  %v1872_v52 = vld [vmem:[#allocation3 + $0x40] sm:$0xff]  }
  0x40   :  { %1675 = vmatprep.subr.bf16.mxu1 %v1845_v53  ;;  %v1873_v53 = vld [vmem:[#allocation3] sm:$0xff]  }
  0x42   :  { %1654 = vmatpush3.bf16.msra.mxu0 %v1846_v54  ;;  %v1874_v54 = vld [vmem:[#allocation3 + $0xc0] sm:$0xff]  }
  0x43   :  { %1676 = vmatpush3.bf16.msra.mxu1 %v1847_v55  ;;  %1655 = vmatprep.subr.bf16.mxu0 %v1848_v56  ;;  %v1875_v55 = vld [vmem:[#allocation3 + $0x80] sm:$0xff]   ;;  %v1876_v56 = vld [vmem:[#allocation3 + $0x48] sm:$0xff]  }
  0x44   :  { %1677 = vmatprep.subr.bf16.mxu1 %v1849_v57  ;;  %v1877_v57 = vld [vmem:[#allocation3 + $0x8] sm:$0xff]  }
  0x46   :  { %1656 = vmatpush3.bf16.msra.mxu0 %v1850_v58  ;;  %v1878_v58 = vld [vmem:[#allocation3 + $0xc8] sm:$0xff]  }
  0x47   :  { %1678 = vmatpush3.bf16.msra.mxu1 %v1851_v59  ;;  %1657 = vmatprep.subr.bf16.mxu0 %v1852_v60  ;;  %v1879_v59 = vld [vmem:[#allocation3 + $0x88] sm:$0xff]   ;;  %v1880_v60 = vld [vmem:[#allocation3 + $0x50] sm:$0xff]  }
  0x48   :  { %1679 = vmatprep.subr.bf16.mxu1 %v1853_v61  ;;  %v1881_v61 = vld [vmem:[#allocation3 + $0x10] sm:$0xff]  }
  0x4a   :  { %1658 = vmatpush3.bf16.msra.mxu0 %v1854_v62  ;;  %v1882_v62 = vld [vmem:[#allocation3 + $0xd0] sm:$0xff]  }
  0x4b   :  { %1680 = vmatpush3.bf16.msra.mxu1 %v1855_v63  ;;  %1659 = vmatprep.subr.bf16.mxu0 %v1856_v0  ;;  %v1883_v63 = vld [vmem:[#allocation3 + $0x90] sm:$0xff]   ;;  %v1884_v0 = vld [vmem:[#allocation3 + $0x58] sm:$0xff]  }
  0x4c   :  { %1681 = vmatprep.subr.bf16.mxu1 %v1857_v1  ;;  %v1885_v1 = vld [vmem:[#allocation3 + $0x18] sm:$0xff]  }
  0x4e   :  { %1660 = vmatpush3.bf16.msra.mxu0 %v1858_v2  ;;  %v1886_v2 = vld [vmem:[#allocation3 + $0xd8] sm:$0xff]  }
  0x4f   :  { %1682 = vmatpush3.bf16.msra.mxu1 %v1859_v3  ;;  %1661 = vmatprep.subr.bf16.mxu0 %v1860_v4  ;;  %v1887_v3 = vld [vmem:[#allocation3 + $0x98] sm:$0xff]   ;;  %v1888_v4 = vld [vmem:[#allocation3 + $0x60] sm:$0xff]  }
  0x50   :  { %1683 = vmatprep.subr.bf16.mxu1 %v1861_v5  ;;  %v1889_v5 = vld [vmem:[#allocation3 + $0x20] sm:$0xff]  }
  0x52   :  { %1662 = vmatpush3.bf16.msra.mxu0 %v1862_v6  ;;  %v1890_v6 = vld [vmem:[#allocation3 + $0xe0] sm:$0xff]  }
  0x53   :  { %1684 = vmatpush3.bf16.msra.mxu1 %v1863_v7  ;;  %1753 = vmatprep.subr.bf16.mxu0 %v1965_v17  ;;  %v1891_v7 = vld [vmem:[#allocation3 + $0xa0] sm:$0xff]  }
  0x54   :  { %1700 = vmatprep.subr.bf16.mxu1 %v1872_v52 }
  0x55   :  { %702 = vmatmul.mubr.bf16.vlgmr.msra.gmra.mrb[4].mxu0 %v66_v14  ;;  %v1897_v14 = vld [vmem:[#allocation3 + $0x30] sm:$0xff]  }
  0x56   :  { %742 = vmatmul.mubr.bf16.vlgmr.msra.gmra.mrb[4].mxu1 %v68_v15  ;;  %1754 = vmatpush3.bf16.msra.mxu0 %v1864_v16  ;;  %v1900_v15 = vld [vmem:[#allocation3 + $0x78] sm:$0xff]   ;;  %v1899_v16 = vld [vmem:[#allocation3 + $0xb0] sm:$0xff]  }
  0x57   :  { %1755 = vmatprep.subr.bf16.mxu0 %v1965_v17  ;;  %1769 = vmatprep.mubr.msk.bf16.mxu0 %vm1966_vm0, %v1965_v17 }
  0x58   :  { %1701 = vmatpush3.bf16.msra.mxu1 %v1873_v53 }
  0x59   :  { %1702 = vmatprep.subr.bf16.mxu1 %v1876_v56 }
  0x5a   :  { %1756 = vmatpush3.bf16.msra.mxu0 %v1865_v18  ;;  %v1902_v18 = vld [vmem:[#allocation3 + $0xf8] sm:$0xff]  }
  0x5b   :  { %1757 = vmatprep.subr.bf16.mxu0 %v1965_v17 }
  0x5c   :  { %1703 = vmatpush3.bf16.msra.mxu1 %v1877_v57 }
  0x5d   :  { %1704 = vmatprep.subr.bf16.mxu1 %v1880_v60 }
  0x5e   :  { %1758 = vmatpush3.bf16.msra.mxu0 %v1866_v19  ;;  %v1901_v19 = vld [vmem:[#allocation3 + $0x38] sm:$0xff]  }
  0x5f   :  { %1759 = vmatprep.subr.bf16.mxu0 %v1965_v17 }
  0x60   :  { %1705 = vmatpush3.bf16.msra.mxu1 %v1881_v61 }
  0x61   :  { %1706 = vmatprep.subr.bf16.mxu1 %v1884_v0 }
  0x62   :  { %1760 = vmatpush3.bf16.msra.mxu0 %v1867_v20  ;;  %v1903_v20 = vld [vmem:[#allocation3 + $0xb8] sm:$0xff]  }
  0x63   :  { %1761 = vmatprep.subr.bf16.mxu0 %v1965_v17 }
  0x64   :  { %1707 = vmatpush3.bf16.msra.mxu1 %v1885_v1 }
  0x65   :  { %1708 = vmatprep.subr.bf16.mxu1 %v1888_v4  ;;  %v1904_v4 = vld [vmem:[%s2390_s9] sm:$0xff]  }
  0x66   :  { %1762 = vmatpush3.bf16.msra.mxu0 %v1868_v21  ;;  %v1967_v21 = vmov 1966171168  }
  0x67   :  { %1763 = vmatprep.subr.bf16.mxu0 %v1965_v17 }
  0x68   :  { %1709 = vmatpush3.bf16.msra.mxu1 %v1889_v5  ;;  %v1905_v5 = vld [vmem:[%s2390_s9 + $0x8] sm:$0xff]  }
  0x69   :  { %1710 = vmatprep.subr.bf16.mxu1 %v1892_v8  ;;  %v1908_v8 = vld [vmem:[%s2390_s9 + $0x20] sm:$0xff]  }
  0x6a   :  { %1764 = vmatpush3.bf16.msra.mxu0 %v1869_v22  ;;  %v871_v22 = vunpack.c.l.s4 %v1967_v21 }
  0x6b   :  { %1765 = vmatprep.subr.bf16.mxu0 %v1965_v17 }
  0x6c   :  { %1711 = vmatpush3.bf16.msra.mxu1 %v1893_v9  ;;  %v1909_v9 = vld [vmem:[%s2390_s9 + $0x28] sm:$0xff]  }
  0x6d   :  { %1712 = vmatprep.subr.bf16.mxu1 %v1896_v12 }
  0x6e   :  { %1766 = vmatpush3.bf16.msra.mxu0 %v1870_v23  ;;  %v873_v23 = vlaneseq }
  0x6f   :  { %1767 = vmatprep.subr.bf16.mxu0 %v1965_v17 }
  0x70   :  { %1713 = vmatpush3.bf16.msra.mxu1 %v1897_v14 }
  0x71   :  { %1714 = vmatprep.subr.bf16.mxu1 %v1900_v15 }
  0x72   :  { %1768 = vmatpush3.bf16.msra.mxu0 %v1871_v24  ;;  %v872_v24 = vunpack.c.0.s8 %v871_v22 }
  0x73   :  { %1722 = vmatprep.subr.bf16.mxu0 %v1874_v54 }
  0x74   :  { %1715 = vmatpush3.bf16.msra.mxu1 %v1901_v19 }
  0x75   :  { %1773 = vmatprep.subr.bf16.mxu1 %v1965_v17 }
 0x108   :  { %v1619_v25 = vpop.f32.mrb[0].mxu0 }
 0x109   :  { %v1641_v26 = vpop.f32.mrb[0].mxu1  ;;  %v1620_v28 = vpop.f32.mrb[1].mxu0 }
 0x10a   :  { %v1642_v29 = vpop.f32.mrb[1].mxu1  ;;  %v1621_v30 = vadd.f32 %v1620_v28, %v1619_v25  ;;  %v1622_v32 = vpop.f32.mrb[2].mxu0  ;;  %v874_v25 = vshrl.u32 %v873_v23, 7 }
 0x10b   :  { %v1643_v31 = vadd.f32 %v1642_v29, %v1641_v26  ;;  %v1644_v33 = vpop.f32.mrb[2].mxu1  ;;  %v1623_v34 = vpop.f32.mrb[3].mxu0  ;;  %v1547_v26 = vld [vmem:[%s2385_s4] ss:$0 sm:$0xff] }
 0x10c   :  { %v1645_v35 = vpop.f32.mrb[3].mxu1  ;;  %v624_v36 = vadd.f32 %v1621_v30, %v1482_v27  ;;  %v875_v29 = vsub.s32 %v872_v24, %v874_v25  ;;  %v866_v32 = vld [vmem:[#allocation2] sm:$0x1] }
 0x10e   :  { %v664_v37 = vadd.f32 %v1643_v31, %v624_v36 }
 0x128   :  { %v1663_v38 = vpop.f32.mrb[4].mxu0 }
 0x129   :  { %v1685_v39 = vpop.f32.mrb[4].mxu1  ;;  %v1664_v40 = vpop.f32.mrb[5].mxu0 }
 0x12a   :  { %v1665_v41 = vadd.f32 %v1664_v40, %v1663_v38  ;;  %v1686_v42 = vpop.f32.mrb[5].mxu1  ;;  %v1666_v43 = vpop.f32.mrb[6].mxu0  ;;  %v890_v40 = vld [vmem:[#allocation2 + $0x1] sm:$0x1] }
 0x12b   :  { %v1687_v44 = vadd.f32 %v1686_v42, %v1685_v39  ;;  %v1688_v45 = vpop.f32.mrb[6].mxu1  ;;  %v1667_v46 = vpop.f32.mrb[7].mxu0 }
 0x12c   :  { %v704_v47 = vadd.f32 %v1665_v41, %v664_v37  ;;  %v1689_v48 = vpop.f32.mrb[7].mxu1  ;;  %v902_v41 = vld [vmem:[#allocation2 + $0x2] sm:$0x1]  ;;  %v911_v45 = vld [vmem:[#allocation2 + $0x3] sm:$0x1] }
 0x12e   :  { %v744_v49 = vadd.f32 %v1687_v44, %v704_v47 }
 0x130   :  { %v749_v50 = vmax.f32 %v744_v49, 0.0 }
 0x132   :  { %v750_v51 = vpack.c.bf16 %v749_v50, %v749_v50 }
 0x134   :  { %1770 = vmatmul.mubr.bf16.vlgmr.msra.gmra.mrb[8].mxu0 %v750_v51 }
 0x135   :  { %1723 = vmatpush3.bf16.msra.mxu0 %v1875_v55 }
 0x136   :  { %1724 = vmatprep.subr.bf16.mxu0 %v1878_v58 }
 0x139   :  { %1725 = vmatpush3.bf16.msra.mxu0 %v1879_v59 }
 0x13a   :  { %1726 = vmatprep.subr.bf16.mxu0 %v1882_v62 }
 0x13d   :  { %1727 = vmatpush3.bf16.msra.mxu0 %v1883_v63 }
 0x13e   :  { %1728 = vmatprep.subr.bf16.mxu0 %v1886_v2 }
 0x141   :  { %1729 = vmatpush3.bf16.msra.mxu0 %v1887_v3 }
 0x142   :  { %1730 = vmatprep.subr.bf16.mxu0 %v1890_v6  ;;  %v1906_v6 = vld [vmem:[%s2390_s9 + $0x10] sm:$0xff]  }
 0x145   :  { %1731 = vmatpush3.bf16.msra.mxu0 %v1891_v7  ;;  %v1907_v7 = vld [vmem:[%s2390_s9 + $0x18] sm:$0xff]  }
 0x146   :  { %1732 = vmatprep.subr.bf16.mxu0 %v1894_v10  ;;  %v1910_v10 = vld [vmem:[%s2390_s9 + $0x30] sm:$0xff]  }
 0x149   :  { %1733 = vmatpush3.bf16.msra.mxu0 %v1895_v11  ;;  %v1911_v11 = vld [vmem:[%s2390_s9 + $0x38] sm:$0xff]  }
 0x14a   :  { %1734 = vmatprep.subr.bf16.mxu0 %v1898_v13  ;;  %v1558_v13 = vld [vmem:[%s2387_s6] ss:$0 sm:$0xff] }
 0x14d   :  { %1735 = vmatpush3.bf16.msra.mxu0 %v1899_v16 }
 0x14e   :  { %1736 = vmatprep.subr.bf16.mxu0 %v1902_v18 }
 0x151   :  { %1737 = vmatpush3.bf16.msra.mxu0 %v1903_v20 }
 0x207   :  { %v856_v27 = vpop.f32.mrb[8].mxu0 }
 0x208   :  { %v857_v28 = vadd.f32 %v1547_v26, %v856_v27  ;;  %v1771_v30 = vpop.f32.mrb[9].mxu0 }
 0x209   :  { %v859_v33 = vpop.f32.mrb[10].mxu0 }
 0x20a   :  { %v862_v34 = vpack.c.bf16 %v857_v28, %v857_v28  ;;  %v1772_v35 = vpop.f32.mrb[11].mxu0 }
 0x20c   :  { %v867_v36 = vsel %vm2299_vm3, %v862_v34, %v866_v32  ;;  %v876_v37 = vrot.slane %v862_v34, %v875_v29 }
 0x20d   :  { %868 = vst [vmem:[#allocation2] sm:$0x1] %v867_v36 }
 0x20e   :  { %v883_v38 = vrot.slane %v876_v37, %v875_v29  ;;  %v893_v39 = vcombine.high %v876_v37, %v876_v37 }
 0x210   :  { %v885_v42 = vshrl.u32 %v883_v38, 16  ;;  %v900_v43 = vrot.slane %v893_v39, %v875_v29  ;;  %v914_v44 = vcombine.high %v883_v38, %v883_v38 }
 0x212   :  { %v891_v46 = vsel %vm2299_vm3, %v885_v42, %v890_v40  ;;  %v903_v47 = vsel %vm2299_vm3, %v900_v43, %v902_v41  ;;  %v906_v48 = vshrl.u32 %v900_v43, 16  ;;  %v916_v49 = vshll.u32 %v914_v44, 16 }
 0x213   :  { %892 = vst [vmem:[#allocation2 + $0x1] sm:$0x1] %v891_v46  ;;  %904 = vst [vmem:[#allocation2 + $0x2] sm:$0x1] %v903_v47  ;;  %v928_v54 = vcombine.high %v900_v43, %v900_v43  ;;  %v1593_v47 = vld [vmem:[%s2389_s8] ss:$0 sm:$0xff] }
 0x214   :  { %v912_v51 = vsel %vm2299_vm3, %v906_v48, %v911_v45  ;;  %v921_v52 = vld [vmem:[#allocation2] sm:$0x1] }
 0x215   :  { %913 = vst [vmem:[#allocation2 + $0x3] sm:$0x1] %v912_v51  ;;  %v922_v53 = vsel %vm2310_vm5, %v916_v49, %v921_v52  ;;  %v930_v55 = vshll.u32 %v928_v54, 16  ;;  %v1592_v45 = vld [vmem:[%s2388_s7] ss:$0 sm:$0xff]  ;;  %s1936_s7 = scalar_lea.vmem %s1474_s2, 32 }
 0x216   :  { %923 = vst [vmem:[#allocation2] sm:$0x1] %v922_v53  ;;  %v1594_v52 = vld [vmem:[%s2391_s10] ss:$0 sm:$0xff]  ;;  %p1937_p8 = scmp.ne.s32.totalorder %s1474_s2, %s1936_s7  ;;  %p1942_p10 = scmp.lt.s32.totalorder %s1936_s7, %s1936_s7 }
 0x218   :  { %p1943_p11 = por %p1942_p10, %p1941_p9 }
 0x21a   :  { %v925_v56 = vld [vmem:[#allocation2 + $0x1] sm:$0x1]  ;;  %v933_v57 = vld [vmem:[#allocation2 + $0x2] sm:$0x1]  ;;  %p1944_p12 = pnand %p1943_p11, %p1937_p8 }
 0x21b   :  { %v926_v58 = vsel %vm2310_vm5, %v914_v44, %v925_v56  ;;  %v934_v59 = vsel %vm2310_vm5, %v930_v55, %v933_v57 }
 0x21c   :  { %927 = vst [vmem:[#allocation2 + $0x1] sm:$0x1] %v926_v58  ;;  %935 = vst [vmem:[#allocation2 + $0x2] sm:$0x1] %v934_v59  ;;  %v937_v60 = vld [vmem:[#allocation2 + $0x3] sm:$0x1] }
 0x21d   :  { %v938_v61 = vsel %vm2310_vm5, %v928_v54, %v937_v60 }
 0x21e   :  { %939 = vst [vmem:[#allocation2 + $0x3] sm:$0x1] %v938_v61 }
 0x225   :  { %v1559_v62 = vld.sshfl [vmem:[#allocation2] sm:$0x33 pattern:$0x75316420] }
 0x226   :  { %v1020_v63 = vcombine.high %v1559_v62, %v1559_v62  ;;  %v1027_v0 = vrot.slane %v1559_v62, %v875_v29 }
 0x228   :  { %v1034_v1 = vrot.slane %v1020_v63, %v875_v29  ;;  %v1035_v3 = vcombine.high %v1027_v0, %v1027_v0 }
 0x22a   :  { %1265 = vmatprep.mubr.bf16.mxu1 %v1034_v1  ;;  %v1036_v2 = vcombine.high %v1034_v1, %v1034_v1 }
 0x22b   :  { %1266 = vmatmul.mubr.bf16.vlgmr.msra.gmra.mrb[8].mxu1 %v1027_v0 }
 0x22c   :  { %1305 = vmatprep.mubr.bf16.mxu0 %v1036_v2  ;;  %1789 = vmatprep.mubr.msk.bf16.mxu1 %vm1966_vm0, %v1965_v17 }
 0x22d   :  { %1306 = vmatmul.mubr.bf16.vlgmr.msra.gmra.mrb[12].mxu0 %v1035_v3  ;;  %1774 = vmatpush3.bf16.msra.mxu1 %v1904_v4 }
 0x22e   :  { %1775 = vmatprep.subr.bf16.mxu1 %v1965_v17 }
 0x231   :  { %1776 = vmatpush3.bf16.msra.mxu1 %v1905_v5 }
 0x232   :  { %1777 = vmatprep.subr.bf16.mxu1 %v1965_v17 }
 0x235   :  { %1778 = vmatpush3.bf16.msra.mxu1 %v1906_v6 }
 0x236   :  { %1779 = vmatprep.subr.bf16.mxu1 %v1965_v17 }
 0x239   :  { %1780 = vmatpush3.bf16.msra.mxu1 %v1907_v7 }
 0x23a   :  { %1781 = vmatprep.subr.bf16.mxu1 %v1965_v17 }
 0x23d   :  { %1782 = vmatpush3.bf16.msra.mxu1 %v1908_v8 }
 0x23e   :  { %1783 = vmatprep.subr.bf16.mxu1 %v1965_v17 }
 0x241   :  { %1784 = vmatpush3.bf16.msra.mxu1 %v1909_v9 }
 0x242   :  { %1785 = vmatprep.subr.bf16.mxu1 %v1965_v17 }
 0x245   :  { %1786 = vmatpush3.bf16.msra.mxu1 %v1910_v10 }
 0x246   :  { %1787 = vmatprep.subr.bf16.mxu1 %v1965_v17 }
 0x249   :  { %1788 = vmatpush3.bf16.msra.mxu1 %v1911_v11 }
 0x2fe   :  { %v1716_v12 = vpop.f32.mrb[8].mxu1 }
 0x2ff   :  { %v1717_v14 = vpop.f32.mrb[9].mxu1 }
 0x300   :  { %v1718_v15 = vadd.f32 %v1717_v14, %v1716_v12  ;;  %v1719_v16 = vpop.f32.mrb[10].mxu1  ;;  %v1738_v18 = vpop.f32.mrb[12].mxu0 }
 0x301   :  { %v1720_v19 = vpop.f32.mrb[11].mxu1  ;;  %v1739_v20 = vpop.f32.mrb[13].mxu0 }
 0x302   :  { %v1268_v21 = vadd.f32 %v1718_v15, %v1558_v13  ;;  %v1740_v22 = vadd.f32 %v1739_v20, %v1738_v18  ;;  %v1741_v23 = vpop.f32.mrb[14].mxu0 }
 0x303   :  { %v1742_v24 = vpop.f32.mrb[15].mxu0 }
 0x304   :  { %v1308_v25 = vadd.f32 %v1740_v22, %v1268_v21 }
 0x306   :  { %v1314_v26 = vsel %vm1313_vm6, %v1308_v25, 0.0 }
 0x307   :  { %v1315_v17 = vrot.slane %v1314_v26, 4 }
 0x309   :  { %v1316_v27 = vadd.f32 %v1315_v17, %v1314_v26 }
 0x30b   :  { %v1317_v28 = vrot.slane %v1316_v27, 2 }
 0x30d   :  { %v1318_v29 = vadd.f32 %v1317_v28, %v1316_v27 }
 0x30f   :  { %v1319_v30 = vrot.slane %v1318_v29, 1 }
 0x311   :  { %v1320_v31 = vadd.f32 %v1319_v30, %v1318_v29 }
 0x313   :  { %v1322_v32 = vmul.f32 0.5, %v1320_v31 }
 0x315   :  { %v1323_v33 = vsub.f32 %v1308_v25, %v1322_v32 }
 0x317   :  { %v1324_v34 = vmul.f32 %v1323_v33, %v1323_v33 }
 0x319   :  { %v1325_v35 = vsel %vm1313_vm6, %v1324_v34, 0.0 }
 0x31a   :  { %v1326_v36 = vrot.slane %v1325_v35, 4 }
 0x31c   :  { %v1327_v37 = vadd.f32 %v1326_v36, %v1325_v35 }
 0x31e   :  { %v1328_v38 = vrot.slane %v1327_v37, 2 }
 0x320   :  { %v1329_v39 = vadd.f32 %v1328_v38, %v1327_v37 }
 0x322   :  { %v1330_v40 = vrot.slane %v1329_v39, 1 }
 0x324   :  { %v1331_v41 = vadd.f32 %v1330_v40, %v1329_v39 }
 0x326   :  { %v1332_v42 = vmul.f32 0.5, %v1331_v41 }
 0x328   :  { %v1334_v43 = vadd.f32 1e-05, %v1332_v42 }
 0x32a   :  { %1912 = vrsqrt.f32 %v1334_v43 }
 0x334   :  { %v1913_v44 = vpop.eup %1912 }
 0x335   :  { %v1336_v46 = vmul.f32 %v1913_v44, %v1323_v33 }
 0x337   :  { %v1343_v48 = vmul.f32 %v1592_v45, %v1336_v46 }
 0x339   :  { %v1351_v49 = vadd.f32 %v1593_v47, %v1343_v48 }
 0x33b   :  { %v1352_v50 = vmax.f32 %v1351_v49, 0.0 }
 0x33d   :  { %v1353_v51 = vpack.c.bf16 %v1352_v50, %v1352_v50 }
 0x33f   :  { %1790 = vmatmul.mubr.bf16.vlgmr.msra.gmra.mrb[12].mxu1 %v1353_v51 }
 0x412   :  { %v1459_v53 = vpop.f32.mrb[12].mxu1 }
 0x413   :  { %v1460_v54 = vadd.f32 %v1594_v52, %v1459_v53  ;;  %v1791_v55 = vpop.f32.mrb[13].mxu1 }
 0x414   :  { %v1462_v56 = vpop.f32.mrb[14].mxu1 }
 0x415   :  { %v1792_v57 = vpop.f32.mrb[15].mxu1  ;;  %1466 = vst.msk [vmem:[#allocation6] sm:$0x3] %vm1465_vm7, %v1460_v54 }
 0x416   :  { %1947 = shalt.err (!%p1944_p12)
}
 0x417   :  { %s1948_s10 = scalar_lea.hbm %s2392_s11, 32 }
 0x418   :  { %p1949_p13 = scmp.ne.s32.totalorder %s2392_s11, %s1948_s10  ;;  %p1952_p0 = scmp.lt.u32.totalorder %s1948_s10, %s2392_s11 }
 0x41a   :  { %p1954_p1 = pnand %p1952_p0, %p1949_p13 }
 0x41c   :  { %1957 = shalt.err (!%p1954_p1)
}
 0x41d   :  { %1476 = dma.vmem_to_hbm [thread:$0]  %s1474_s2, 32, %s2392_s11, [#allocation5]  }
 0x41e   :  { %1960 = dma.done.wait [#allocation5], 32  }
 0x41f   :  { %1961 = vsyncadd [#allocation5], 4294967264 }
 0x420   :  { %1480 = vsyncpa [#allocation4], 1 }
 0x421   :  { %1481 = vsyncpa [#allocation5], 1 }

</bundles_post_ra>
